<compile_context>
chip_gen: v7x
topology: tpu7x:2x2x1
jax: 0.10.0
libtpu: 0.0.40
codegen_flags: <defaults>
</compile_context>

<pallas_src>
import jax
import jax.numpy as jnp
from jax import lax
from jax.experimental import pallas as pl
from jax.experimental.pallas import tpu as pltpu

NEG_SLOPE = 0.2  # LeakyReLU slope used by SE_ResBlock


def _leaky_relu(x, slope=NEG_SLOPE):
    return jnp.where(x >= 0, x, slope * x)


# ---------------------------------------------------------------------------
# Pallas kernel: SE scale + residual + LeakyReLU + NLC->NCL store, one
# (batch, L-tile) block per grid step.
# ---------------------------------------------------------------------------
def _se_scale_res_act_kernel(u_ref, r_ref, g_ref, o_ref):
    # u_ref / r_ref : (TL, C) bf16    (batch dim squeezed by BlockSpec)
    # g_ref         : (1,  C) bf16    per-batch SE gate
    # o_ref         : (C, TL) bf16    NCL output tile (lane-dense in L)
    u = u_ref[...]
    r = r_ref[...]
    g = g_ref[...]
    # bf16 VPU math on v6e/v7x (Mosaic widens on v5e); gate broadcasts over
    # sublanes, residual add and LeakyReLU fused into the same pass.
    z = u * g + r
    z = jnp.where(z >= 0, z, NEG_SLOPE * z)
    # Fused NLC -> NCL: XLU transpose rides an otherwise-idle slot in this
    # mem-bound kernel, and the store becomes lane-dense in L (even for C<128).
    o_ref[...] = z.T


def _pick_l_tile(L, C, itemsize=2, target_bytes=2 * 1024 * 1024):
    """Largest L-tile that (a) keeps BlockSpecs legal and (b) gives ~1-2 MiB
    bf16 blocks so the pipeline stays near the HBM roofline."""
    if L % 128 != 0 or L * C * itemsize <= target_bytes:
        # Full-extent block along L is always legal.
        # TODO(synk): for huge L not divisible by 128, add a padded/ragged tile
        # path instead of one whole-L block.
        return L
    tl = 128
    for cand in range(128, L + 1, 128):
        if L % cand == 0 and cand * C * itemsize <= target_bytes:
            tl = cand
    return tl


def _vmem_limit_bytes():
    """Generation-aware VMEM limit: <= half of physical per-core VMEM,
    capped at 64 MiB (so v7x gets 32 MiB, v5e/v6e get 64 MiB)."""
    try:
        cap = pltpu.get_tpu_info().vmem_capacity_bytes
    except Exception:
        cap = 128 * 1024 * 1024
    return int(min(cap // 2, 64 * 1024 * 1024))


def fused_se_residual_act(u, residual, gate):
    """u, residual: (B, L, C) bf16; gate: (B, 1, C) bf16 -> (B, C, L) bf16."""
    B, L, C = u.shape
    TL = _pick_l_tile(L, C)
    nlt = L // TL
    return pl.pallas_call(
        _se_scale_res_act_kernel,
        out_shape=jax.ShapeDtypeStruct((B, C, L), u.dtype),
        grid=(B, nlt),
        in_specs=[
            pl.BlockSpec((None, TL, C), lambda b, l: (b, l, 0)),  # SE input
            pl.BlockSpec((None, TL, C), lambda b, l: (b, l, 0)),  # residual
            pl.BlockSpec((None, 1, C), lambda b, l: (b, 0, 0)),   # gate
        ],
        out_specs=pl.BlockSpec((None, C, TL), lambda b, l: (b, 0, l)),
        compiler_params=pltpu.CompilerParams(
            # Gate is precomputed, so every (b, l) tile is independent: both
            # axes parallel -> megacore can shard whichever keeps both v7x
            # TensorCores loaded even at small / odd batch sizes.
            dimension_semantics=("parallel", "parallel"),
            vmem_limit_bytes=_vmem_limit_bytes(),
        ),
    )(u, residual, gate)


# ---------------------------------------------------------------------------
# XLA trunk: conv1d ('same') + batch-norm (eval mode), channel-last.
# ---------------------------------------------------------------------------
def _conv1d_same_nlc(x, w, b):
    """x: (B, L, Cin); w: PyTorch layout (Cout, Cin, K); b: (Cout,).
    Matches PyTorch padding='same' for odd K (K=3 here)."""
    rhs = jnp.transpose(w, (2, 1, 0))                        # (K, Cin, Cout)
    y = lax.conv_general_dilated(
        x, rhs, window_strides=(1,), padding="SAME",
        dimension_numbers=("NWC", "WIO", "NWC"))
    return y + b[None, None, :]


def _batchnorm_nlc(x, gamma, beta, mean, var, eps=1e-5):
    scale = gamma * lax.rsqrt(var + eps)
    return x * scale[None, None, :] + (beta - mean * scale)[None, None, :]


def _se_gate(out_nlc, w1, w2t):
    """SE excite gate, f32: mean over L, fc(C->H) ReLU fc(H->C) sigmoid.
    SELayer1D uses Linear(..., bias=False), so no biases here (matches spec)."""
    y = jnp.mean(out_nlc, axis=1)                            # (B, C)
    h = jnp.maximum(y @ w1.T, 0.0)                           # (B, H)
    return jax.nn.sigmoid(h @ w2t)                           # (B, C)


def se_resblock_forward(x_ncl, p):
    """x_ncl: (B, Cin, L) f32 -> (B, Cout, L) bf16.  Eval-mode forward."""
    # NCL -> NLC once so the channel axis sits on TPU lanes for the convs.
    x = jnp.transpose(x_ncl, (0, 2, 1))

    s = p["shortcut"]
    if s is None:
        residual = x                                         # identity shortcut
    else:
        residual = _conv1d_same_nlc(x, s["w"], s["b"])
        residual = _batchnorm_nlc(residual, *s["bn"])

    out = _conv1d_same_nlc(x, p["conv1_w"], p["conv1_b"])
    out = _batchnorm_nlc(out, *p["bn1"])
    out = _leaky_relu(out)
    # TODO(synk): dropout1 / dropout2 are inference-mode identities here.
    out = _conv1d_same_nlc(out, p["conv2_w"], p["conv2_b"])
    out = _batchnorm_nlc(out, *p["bn2"])
    # TODO(synk): BatchNorm uses running (eval) statistics, not batch stats.

    # SE gate precomputed in f32 (tiny; fuses with the conv2/BN2 epilogue), so
    # the Pallas kernel is a pure streaming scale+add+activation.
    g = _se_gate(out, p["se_w1"], p["se_w2t"])               # (B, C)

    # bf16 I/O into the bandwidth-bound fused kernel.
    u = out.astype(jnp.bfloat16)
    r = residual.astype(jnp.bfloat16)   # use_residual=True; pass zeros if not
    gb = g[:, None, :].astype(jnp.bfloat16)                  # (B, 1, C)
    return fused_se_residual_act(u, r, gb)                   # (B, C, L) bf16


# ---------------------------------------------------------------------------
# Pure-JAX reference (mirrors the PyTorch forward, eval mode, same bf16
# rounding as the kernel path so the comparison is apples-to-apples).
# ---------------------------------------------------------------------------
def se_resblock_ref(x_ncl, p):
    x = jnp.transpose(x_ncl, (0, 2, 1))
    s = p["shortcut"]
    if s is None:
        residual = x
    else:
        residual = _batchnorm_nlc(_conv1d_same_nlc(x, s["w"], s["b"]), *s["bn"])
    out = _conv1d_same_nlc(x, p["conv1_w"], p["conv1_b"])
    out = _batchnorm_nlc(out, *p["bn1"])
    out = _leaky_relu(out)
    out = _conv1d_same_nlc(out, p["conv2_w"], p["conv2_b"])
    out = _batchnorm_nlc(out, *p["bn2"])
    g = _se_gate(out, p["se_w1"], p["se_w2t"])
    u = out.astype(jnp.bfloat16)
    r = residual.astype(jnp.bfloat16)
    gb = g[:, None, :].astype(jnp.bfloat16)
    z = u * gb + r
    z = jnp.where(z >= 0, z, NEG_SLOPE * z)
    return jnp.transpose(z, (0, 2, 1))                       # (B, C, L) bf16


if __name__ == "__main__":
    B, C_IN, C_OUT, L, K = 2, 16, 32, 16, 3
    reduction = max(4, C_OUT // 16)        # matches SE_ResBlock.__init__
    hidden = C_OUT // reduction            # 8

    key = jax.random.PRNGKey(0)
    ks = jax.random.split(key, 16)

    def nrm(k, shape, scale=0.1):
        return jax.random.normal(k, shape, dtype=jnp.float32) * scale

    x = jax.random.normal(ks[0], (B, C_IN, L), dtype=jnp.float32)

    params = {
        "conv1_w": nrm(ks[1], (C_OUT, C_IN, K)),
        "conv1_b": nrm(ks[2], (C_OUT,)),
        "bn1": (1.0 + nrm(ks[3], (C_OUT,)),            # gamma
                nrm(ks[4], (C_OUT,)),                  # beta
                nrm(ks[5], (C_OUT,)),                  # running_mean
                1.0 + jnp.abs(nrm(ks[6], (C_OUT,)))),  # running_var
        "conv2_w": nrm(ks[7], (C_OUT, C_OUT, K)),
        "conv2_b": nrm(ks[8], (C_OUT,)),
        "bn2": (1.0 + nrm(ks[9], (C_OUT,)),
                nrm(ks[10], (C_OUT,)),
                nrm(ks[11], (C_OUT,)),
                1.0 + jnp.abs(nrm(ks[12], (C_OUT,)))),
        # in_channels != out_channels -> conv1x1 + BN shortcut (as in PyTorch).
        "shortcut": {
            "w": nrm(ks[13], (C_OUT, C_IN, 1)),
            "b": jnp.zeros((C_OUT,), jnp.float32),
            "bn": (jnp.ones((C_OUT,), jnp.float32),
                   jnp.zeros((C_OUT,), jnp.float32),
                   jnp.zeros((C_OUT,), jnp.float32),
                   jnp.ones((C_OUT,), jnp.float32)),
        },
        # SE weights (bias=False in SELayer1D):
        #   se_w1  = fc[0].weight   (H, C)
        #   se_w2t = fc[2].weight.T (H, C)
        "se_w1": nrm(ks[14], (hidden, C_OUT)),
        "se_w2t": nrm(ks[15], (hidden, C_OUT)),
    }

    out = jax.jit(se_resblock_forward)(x, params)
    jax.block_until_ready(out)

    ref = se_resblock_ref(x, params)
    assert out.shape == (B, C_OUT, L), out.shape
    out_f = out.astype(jnp.float32)
    ref_f = ref.astype(jnp.float32)
    err = float(jnp.max(jnp.abs(out_f - ref_f)))
    assert jnp.allclose(out_f, ref_f, atol=2e-2, rtol=2e-2), err

    print("KERNEL_OK")
</pallas_src>

<mosaic_0001>
module attributes {stable_mosaic.version = 11 : i64} {
  func.func @_se_scale_res_act_kernel(%arg0: i32, %arg1: i32, %arg2: memref<1x16x32xbf16, #tpu.memory_space<vmem>>, %arg3: memref<1x16x32xbf16, #tpu.memory_space<vmem>>, %arg4: memref<1x1x32xbf16, #tpu.memory_space<vmem>>, %arg5: memref<1x32x16xbf16, #tpu.memory_space<vmem>>) attributes {dimension_semantics = [#tpu.dimension_semantics<parallel>, #tpu.dimension_semantics<parallel>], iteration_bounds = array<i64: 2, 1>, scalar_prefetch = 0 : i64, scratch_operands = 0 : i64, tpu.core_type = #tpu.core_type<tc>, window_params = [{transform_indices = @transform_0, window_bounds = array<i64: 1, 16, 32>}, {transform_indices = @transform_1, window_bounds = array<i64: 1, 16, 32>}, {transform_indices = @transform_2, window_bounds = array<i64: 1, 1, 32>}, {transform_indices = @transform_3, window_bounds = array<i64: 1, 32, 16>}]} {
    %c0 = arith.constant 0 : index
    %c0_0 = arith.constant 0 : index
    %c0_1 = arith.constant 0 : index
    %0 = vector.load %arg2[%c0, %c0_0, %c0_1] : memref<1x16x32xbf16, #tpu.memory_space<vmem>>, vector<1x16x32xbf16>
    %1 = vector.shape_cast %0 : vector<1x16x32xbf16> to vector<16x32xbf16>
    %c0_2 = arith.constant 0 : index
    %c0_3 = arith.constant 0 : index
    %c0_4 = arith.constant 0 : index
    %2 = vector.load %arg3[%c0_2, %c0_3, %c0_4] : memref<1x16x32xbf16, #tpu.memory_space<vmem>>, vector<1x16x32xbf16>
    %3 = vector.shape_cast %2 : vector<1x16x32xbf16> to vector<16x32xbf16>
    %c0_5 = arith.constant 0 : index
    %c0_6 = arith.constant 0 : index
    %c0_7 = arith.constant 0 : index
    %4 = vector.load %arg4[%c0_5, %c0_6, %c0_7] : memref<1x1x32xbf16, #tpu.memory_space<vmem>>, vector<1x1x32xbf16>
    %5 = vector.shape_cast %4 : vector<1x1x32xbf16> to vector<1x32xbf16>
    %6 = vector.broadcast %5 : vector<1x32xbf16> to vector<16x32xbf16>
    %7 = arith.mulf %1, %6 : vector<16x32xbf16>
    %8 = arith.addf %7, %3 : vector<16x32xbf16>
    %cst = arith.constant 0.000000e+00 : bf16
    %9 = vector.broadcast %cst : bf16 to vector<16x32xbf16>
    %10 = arith.cmpf oge, %8, %9 : vector<16x32xbf16>
    %cst_8 = arith.constant 2.001950e-01 : bf16
    %11 = vector.broadcast %cst_8 : bf16 to vector<16x32xbf16>
    %12 = arith.mulf %11, %8 : vector<16x32xbf16>
    %13 = arith.select %10, %8, %12 : vector<16x32xi1>, vector<16x32xbf16>
    %14 = tpu.transpose %13, [1, 0] : vector<16x32xbf16> -> vector<32x16xbf16>
    %c0_9 = arith.constant 0 : index
    %c0_10 = arith.constant 0 : index
    %c0_11 = arith.constant 0 : index
    %15 = vector.load %arg5[%c0_9, %c0_10, %c0_11] : memref<1x32x16xbf16, #tpu.memory_space<vmem>>, vector<1x32x16xbf16>
    %16 = vector.shape_cast %15 : vector<1x32x16xbf16> to vector<32x16xbf16>
    %17 = vector.shape_cast %14 : vector<32x16xbf16> to vector<1x32x16xbf16>
    tpu.vector_store %arg5[%c0_9, %c0_10, %c0_11], %17 {strides = array<i32>} : memref<1x32x16xbf16, #tpu.memory_space<vmem>>, vector<1x32x16xbf16>,
    return
  }
  func.func @transform_0(%arg0: i32, %arg1: i32) -> (i32, i32, i32) {
    %c0_i32 = arith.constant 0 : i32
    %c0_i32_0 = arith.constant 0 : i32
    return %arg0, %arg1, %c0_i32 : i32, i32, i32
  }
  func.func @transform_1(%arg0: i32, %arg1: i32) -> (i32, i32, i32) {
    %c0_i32 = arith.constant 0 : i32
    %c0_i32_0 = arith.constant 0 : i32
    return %arg0, %arg1, %c0_i32 : i32, i32, i32
  }
  func.func @transform_2(%arg0: i32, %arg1: i32) -> (i32, i32, i32) {
    %c0_i32 = arith.constant 0 : i32
    %c0_i32_0 = arith.constant 0 : i32
    %c0_i32_1 = arith.constant 0 : i32
    return %arg0, %c0_i32, %c0_i32_0 : i32, i32, i32
  }
  func.func @transform_3(%arg0: i32, %arg1: i32) -> (i32, i32, i32) {
    %c0_i32 = arith.constant 0 : i32
    %c0_i32_0 = arith.constant 0 : i32
    return %arg0, %c0_i32, %arg1 : i32, i32, i32
  }
}

</mosaic_0001>

<bundles_post_ra>
// kernel: se_resblock_forward.1
= control target key start
LH: loop header
LB: loop body
LE: loop exit
PB: predicated region body
PF: predicated region fallthrough
CT: control target
= control target key end

     0   :  { %s1081_s0 = inlined_call_operand.hbm [shape: bf16[2,16,32], index: 0, kind: input, shape index: {}]   ;;  %s1082_s1 = inlined_call_operand.hbm [shape: bf16[2,16,32], index: 1, kind: input, shape index: {}]   ;;  %s1083_s2 = inlined_call_operand.hbm [shape: bf16[2,1,32], index: 2, kind: input, shape index: {}]   ;;  %s1084_s3 = inlined_call_operand.hbm [shape: bf16[2,32,16], index: 3, kind: output, shape index: {}]  }
   0x1   :  { %1091 = sst [smem:[#allocation13_spill]] %s1081_s0 }
   0x2   :  { %1092 = sst [smem:[#allocation14_spill]] %s1082_s1 }
   0x3   :  { %8 = vsyncpa [#allocation3], 0 }
   0x4   :  { %10 = vsyncpa [#allocation3 + $0x1], 0 }
   0x5   :  { %11 = vsyncpa [#allocation6], 0 }
   0x6   :  { %13 = vsyncpa [#allocation6 + $0x1], 0 }
   0x7   :  { %14 = vsyncpa [#allocation4], 0 }
   0x8   :  { %16 = vsyncpa [#allocation4 + $0x1], 0  ;;  %s809_s12 = smov 0   ;;  %s811_s13 = smov 0  }
   0x9   :  { %s813_s14 = smov 0   ;;  %s815_s15 = smov 0  }
   0xa   :  { %s817_s16 = smov 0   ;;  %s819_s17 = smov 0  }
   0xb LB: > { %s840_s18 = sadd.s32 4294967295, %s779_s17   ;;  %s498_s19 = sadd.s32 4294967294, %s779_s17   ;;  %s779_s17 = sphi %s819_s17, %s22_s17   ;;  %s775_s16 = sphi %s817_s16, %s1118_s16   ;;  %s771_s15 = sphi %s815_s15, %s1117_s15   ;;  %s767_s14 = sphi %s813_s14, %s1116_s14   ;;  %s763_s13 = sphi %s811_s13, %s1115_s13   ;;  %s759_s12 = sphi %s809_s12, %s1114_s12  }
   0xc   : > { %s34_s20 = sadd.s32 1, %s775_s16  ;;  %s43_s21 = sadd.s32 1, %s767_s14 }
   0xd   : > { %p36_p0 = scmp.ge.s32.totalorder %s34_s20, 2  ;;  %p50_p1 = scmp.ne.s32.totalorder %s767_s14, %s763_s13 }
   0xe   : > { %p51_p2 = scmp.eq.s32.totalorder %s779_s17, 0  ;;  %p56_p3 = scmp.ne.s32.totalorder %s763_s13, %s759_s12 }
   0xf   : > { %s1120_s20 = smov (%p36_p0, %s34_s20), 0  ;;  %p57_p5 = scmp.eq.s32.totalorder %s840_s18, 0 }
  0x10   : > { %1093 = sst [smem:[#allocation12_spill]] %s1120_s20  ;;  %p852_p4 = por %p51_p2, %p50_p1 }
  0x11   : > { %s38_s23 = ssub.s32 %s775_s16, %s1120_s20  ;;  %p136_p6 = scmp.eq.s32.totalorder %s840_s18, 1 }
  0x12   : > { %p41_p7 = scmp.eq.s32.totalorder %s38_s23, 0  ;;  %p860_p8 = por %p57_p5, %p56_p3 }
  0x13   : > { %p864_p9 = por %p136_p6, %p50_p1  ;;  %p142_p10 = scmp.eq.s32.totalorder %s498_s19, 1 }
  0x14   : > { %s1095_s24 = scalar_select %p860_p8, 1, 0 }
  0x15   : > { %s1096_s25 = scalar_select %p864_p9, 1, 0 }
  0x16   : > { %s869_s26 = scalar_select %p41_p7, %s767_s14, %s43_s21  }
  0x17   : > { %p871_p11 = por %p142_p10, %p56_p3  ;;  %p548_p13 = scmp.lt.s32.totalorder %s779_s17, 2 }
  0x18   : > { %s878_s28 = sand.u32 1, %s767_s14   ;;  %s523_s30 = sshll.u32 %s775_s16, 7 }
  0x19   : > { %s1097_s27 = scalar_select %p871_p11, 1, 0 }
  0x1a   : > { %s501_s29 = sshll.u32 %s878_s28, 3  ;;  %p884_p0 = pnand %p548_p13, %p852_p4 }
  0x1b   : > { %s185_s5 = sand.u32 1, %s779_s17   ;;  %s1099_s1 = sld [smem:[#allocation14_spill]] }
  0x1c   : > { %s1098_s4 = scalar_select %p884_p0, 1, 0 }
  0x1d   : > { %s189_s9 = scalar_lea.vmem [#allocation5], %s501_s29  ;;  %s902_s11 = scalar_lea.sflag [#allocation6], %s185_s5 }
  0x1e   : > { %s198_s10 = sshll.u32 %s189_s9, 4  ;;  %p908_p4 = pneg %p884_p0  ;;  %s899_s10 = int_to_ptr.vmem [resolvable:$true] %s198_s10 }
  0x21   : > { %s894_s8 = scalar_lea.hbm %s1099_s1, %s523_s30  ;;  %s608_s6 = scalar_lea.hbm %s1099_s1, 256 }
  0x22   : > { %s603_s19 = scalar_lea.hbm %s894_s8, 128  ;;  %p609_p7 = scmp.lt.u32.totalorder %s894_s8, %s1099_s1 }
  0x23   : > { %p604_p3 = scmp.ne.s32.totalorder %s894_s8, %s603_s19  ;;  %p610_p10 = scmp.lt.u32.totalorder %s608_s6, %s603_s19 }
  0x24   : > { %p612_p12 = scmp.lt.u32.totalorder %s603_s19, %s894_s8 }
  0x25   : > { %p606_p5 = pnand %p908_p4, %p604_p3  ;;  %p611_p13 = por %p610_p10, %p609_p7 }
  0x27   : > { %p607_p6 = pneg %p606_p5  ;;  %p613_p1 = por %p612_p12, %p611_p13 }
  0x29   : > { %p614_p2 = pnand %p613_p1, %p607_p6 }
  0x2b   : > { %617 = shalt.err (!%p614_p2)
}
  0x2c   : > { %s618_s5 = scalar_lea.vmem %s899_s10, 128  ;;  %s781_s22 = smov [#allocation5]  }
  0x2d   : > { %p619_p3 = scmp.ne.s32.totalorder %s899_s10, %s618_s5  ;;  %s623_s23 = sshll.u32 %s781_s22, 4  ;;  %s624_s23 = int_to_ptr.vmem [resolvable:$false] %s623_s23 }
  0x2e   : > { %s625_s7 = scalar_lea.vmem %s624_s23, 256  ;;  %p626_p9 = scmp.lt.s32.totalorder %s899_s10, %s624_s23 }
  0x2f   : > { %p621_p5 = pnand %p619_p3, %p908_p4  ;;  %p627_p8 = scmp.lt.s32.totalorder %s625_s7, %s618_s5 }
  0x31   : > { %p622_p11 = pneg %p621_p5  ;;  %p628_p7 = por %p627_p8, %p626_p9 }
  0x33   : > { %p629_p10 = pnand %p628_p7, %p622_p11 }
  0x35   : > { %632 = shalt.err (!%p629_p10)
}
  0x36   : > { %s1087_s19 = smov 64   ;;  %s1088_s6 = smov 4  }
  0x37   : > { %540 = dma.hbm_to_vmem [thread:$0]  (!%p884_p0), %s894_s8, 128, %s899_s10, %s902_s11, %s1087_s19, %s1087_s19, %s1088_s6  }
  0x38   : > { %p1101_p8 = scmp.lt.s32.totalorder %s779_s17, 3  ;;  %p1102_p9 = scmp.ge.s32.totalorder %s779_s17, 1 }
  0x39   : > { %s1104_s0 = sld [smem:[#allocation13_spill]]  ;;  %s166_s7 = scalar_lea.vmem [#allocation2], %s501_s29 }
  0x3a   : > { %p939_p11 = pnand %p1102_p9, %p1101_p8  ;;  %s175_s1 = sshll.u32 %s166_s7, 4  ;;  %s952_s1 = int_to_ptr.vmem [resolvable:$true] %s175_s1 }
  0x3b   : > { %s507_s8 = sshll.u32 %s775_s16, 4  ;;  %s163_s10 = scalar_lea.sflag [#allocation3], %s878_s28 }
  0x3c   : > { %s1103_s9 = scalar_select %p939_p11, 1, 0 }
  0x3f   : > { %s948_s23 = scalar_lea.hbm %s1104_s0, %s523_s30  ;;  %s638_s30 = scalar_lea.hbm %s1104_s0, 256 }
  0x40   : > { %s633_s19 = scalar_lea.hbm %s948_s23, 128  ;;  %p639_p6 = scmp.lt.u32.totalorder %s948_s23, %s1104_s0 }
  0x41   : > { %p634_p12 = scmp.ne.s32.totalorder %s948_s23, %s633_s19  ;;  %p640_p13 = scmp.lt.u32.totalorder %s638_s30, %s633_s19 }
  0x42   : > { %p642_p5 = scmp.lt.u32.totalorder %s633_s19, %s948_s23 }
  0x43   : > { %p636_p1 = pnand %p634_p12, %p908_p4  ;;  %p641_p3 = por %p640_p13, %p639_p6 }
  0x45   : > { %p637_p2 = pneg %p636_p1  ;;  %p643_p7 = por %p642_p5, %p641_p3 }
  0x47   : > { %p644_p10 = pnand %p643_p7, %p637_p2 }
  0x49   : > { %647 = shalt.err (!%p644_p10)
}
  0x4a   : > { %s648_s29 = scalar_lea.vmem %s952_s1, 128  ;;  %s784_s6 = smov [#allocation2]  }
  0x4b   : > { %p649_p8 = scmp.ne.s32.totalorder %s952_s1, %s648_s29  ;;  %s653_s7 = sshll.u32 %s784_s6, 4  ;;  %s654_s7 = int_to_ptr.vmem [resolvable:$false] %s653_s7 }
  0x4c   : > { %s655_s20 = scalar_lea.vmem %s654_s7, 256  ;;  %p656_p1 = scmp.lt.s32.totalorder %s952_s1, %s654_s7 }
  0x4d   : > { %p651_p9 = pnand %p649_p8, %p908_p4  ;;  %p657_p11 = scmp.lt.s32.totalorder %s655_s20, %s648_s29 }
  0x4f   : > { %p652_p12 = pneg %p651_p9  ;;  %p658_p6 = por %p657_p11, %p656_p1 }
  0x51   : > { %p659_p13 = pnand %p658_p6, %p652_p12 }
  0x53   : > { %662 = shalt.err (!%p659_p13)
}
  0x54   : > { %s1105_s19 = smov 4   ;;  %s1106_s5 = smov 64  }
  0x55   : > { %537 = dma.hbm_to_vmem [thread:$0]  (!%p884_p0), %s948_s23, 128, %s952_s1, %s163_s10, %s1106_s5, %s1106_s5, %s1105_s19  }
  0x56   : > { %s987_s29 = scalar_lea.hbm %s1083_s2, %s507_s8  ;;  %s211_s6 = scalar_lea.vmem [#allocation7], %s878_s28 }
  0x57   : > { %s218_s7 = sshll.u32 %s211_s6, 4  ;;  %s663_s20 = scalar_lea.hbm %s987_s29, 16  ;;  %s219_s7 = int_to_ptr.vmem [resolvable:$true] %s218_s7 }
  0x58   : > { %p664_p11 = scmp.ne.s32.totalorder %s987_s29, %s663_s20  ;;  %s668_s23 = scalar_lea.hbm %s1083_s2, 32 }
  0x59   : > { %p669_p5 = scmp.lt.u32.totalorder %s987_s29, %s1083_s2  ;;  %p670_p7 = scmp.lt.u32.totalorder %s668_s23, %s663_s20 }
  0x5a   : > { %p666_p2 = pnand %p664_p11, %p908_p4  ;;  %p672_p8 = scmp.lt.u32.totalorder %s663_s20, %s987_s29 }
  0x5b   : > { %p671_p10 = por %p670_p7, %p669_p5 }
  0x5c   : > { %p667_p3 = pneg %p666_p2 }
  0x5d   : > { %p673_p9 = por %p672_p8, %p671_p10 }
  0x5f   : > { %p674_p12 = pnand %p673_p9, %p667_p3 }
  0x61   : > { %677 = shalt.err (!%p674_p12)
}
  0x62   : > { %s678_s28 = scalar_lea.vmem %s219_s7, 16  ;;  %s785_s8 = smov [#allocation7]  }
  0x63   : > { %p679_p1 = scmp.ne.s32.totalorder %s219_s7, %s678_s28  ;;  %s683_s5 = sshll.u32 %s785_s8, 4  ;;  %s684_s5 = int_to_ptr.vmem [resolvable:$false] %s683_s5 }
  0x64   : > { %s685_s0 = scalar_lea.vmem %s684_s5, 32  ;;  %p686_p11 = scmp.lt.s32.totalorder %s219_s7, %s684_s5 }
  0x65   : > { %p681_p6 = pnand %p679_p1, %p908_p4  ;;  %p687_p2 = scmp.lt.s32.totalorder %s685_s0, %s678_s28 }
  0x67   : > { %p682_p13 = pneg %p681_p6  ;;  %p688_p0 = por %p687_p2, %p686_p11 }
  0x69   : > { %p689_p5 = pnand %p688_p0, %p682_p13 }
  0x6b   : > { %692 = shalt.err (!%p689_p5)
}
  0x6c   : > { %p1107_p7 = scmp.ne.s32.totalorder %s1098_s4, 0  ;;  %p1108_p3 = scmp.ne.s32.totalorder %s1103_s9, 0 }
  0x6d   : > { %s1011_s21 = sand.u32 (!%p1108_p3), 1, %s763_s13   ;;  %p1109_p4 = scmp.ne.s32.totalorder (!%p1108_p3), %s1095_s24, 0 }
  0x6e   : > { %543 = dma.hbm_to_vmem [thread:$0]  (!%p1107_p7), %s987_s29, 16, %s219_s7, %s902_s11  }
  0x6f   : > { %227 = sbr.rel (%p1108_p3) target bundleno = 265 (0x109), region = 32  ;;  %s509_s30 = sshll.u32 (!%p1108_p3), %s1011_s21, 3 }
  0x70   : > { %s230_s22 = scalar_lea.sflag (!%p1108_p3), [#allocation3], %s1011_s21  ;;  %s233_s6 = scalar_lea.vmem (!%p1108_p3), [#allocation2], %s509_s30 }
  0x76   : > { %746 = dma.done.wait (%p1109_p4), %s230_s22, 128  }
  0x77   : > { %748 = vsyncadd (%p1109_p4), %s230_s22, 4294967168  ;;  %s238_s4 = sand.u32 1, %s840_s18   ;;  %s242_s9 = scalar_lea.vmem [#allocation5], %s509_s30 }
  0x78   : > { %s239_s11 = scalar_lea.sflag [#allocation6], %s238_s4 }
  0x79   : > { %750 = dma.done.wait (%p1109_p4), %s239_s11, 144  }
  0x7a   : > { %752 = vsyncadd (%p1109_p4), %s239_s11, 4294967152  ;;  %v294_v0 = vlaneseq  ;;  %s250_s29 = scalar_lea.vmem [#allocation7], %s1011_s21  ;;  %v286_v6 = vld [vmem:[%s233_s6] sm:$0xf]  ;;  %v287_v7 = vld [vmem:[%s233_s6 + $0x4] sm:$0xf] }
  0x7b   : > { %v290_v3 = vld [vmem:[%s250_s29] sm:$0x1]  ;;  %v288_v9 = vld [vmem:[%s242_s9] sm:$0xf]  ;;  %v289_v10 = vld [vmem:[%s242_s9 + $0x4] sm:$0xf] }
  0x7c   : > { %v295_v1 = vshrl.u32 %v294_v0, 7  ;;  %v292_v4 = vpack.i.b16 %v290_v3, %v290_v3  ;;  %s511_s18 = sshll.u32 %s1011_s21, 4  ;;  %vm348_vm2 = vcmask 125952   ;;  %s525_s20 = sshll.u32 %s771_s15, 8 }
  0x7d   : > { %s281_s24 = scalar_lea.vmem [#allocation8], %s511_s18  ;;  %s1032_s10 = scalar_lea.hbm %s1084_s3, %s525_s20 }
  0x7e   : > { %v296_v2 = vsub.s32 0, %v295_v1  ;;  %s368_s7 = sshll.u32 %s281_s24, 4  ;;  %s354_s19 = scalar_lea.sflag [#allocation4], %s1011_s21  ;;  %s1027_s7 = int_to_ptr.vmem [resolvable:$true] %s368_s7 }
  0x7f   : > { %s693_s28 = scalar_lea.vmem %s1027_s7, 256  ;;  %p1110_p10 = scmp.ne.s32.totalorder %s1096_s25, 0 }
  0x80   : > { %v297_v5 = vrot.slane %v292_v4, %v296_v2  ;;  %p694_p0 = scmp.ne.s32.totalorder %s1027_s7, %s693_s28  ;;  %s786_s15 = smov [#allocation8]  }
  0x81   : > { %s697_s8 = sshll.u32 %s786_s15, 4  ;;  %s698_s8 = int_to_ptr.vmem [resolvable:$false] %s697_s8 }
  0x82   : > { %v512_v8 = vcombine.low %v297_v5, %v297_v5  ;;  %p695_p8 = pnand %p694_p0, %p1110_p10  ;;  %s699_s5 = scalar_lea.vmem %s698_s8, 512 }
  0x83   : > { %p700_p12 = scmp.lt.s32.totalorder %s1027_s7, %s698_s8  ;;  %p701_p1 = scmp.lt.s32.totalorder %s699_s5, %s693_s28 }
  0x84   : > { %v302_v11 = vmul.bf16 %v512_v8, %v286_v6  ;;  %v303_v12 = vmul.bf16 %v512_v8, %v287_v7  ;;  %p696_p9 = pneg %p695_p8 }
  0x85   : > { %p702_p6 = por %p701_p1, %p700_p12 }
  0x86   : > { %v304_v13 = vadd.bf16 %v302_v11, %v288_v9  ;;  %v305_v14 = vadd.bf16 %v303_v12, %v289_v10 }
  0x87   : > { %p703_p13 = pnand %p702_p6, %p696_p9 }
  0x88   : > { %vm306_vm0 = vcmp.ge.bf16.partialorder %v304_v13, 0  ;;  %vm307_vm1 = vcmp.ge.bf16.partialorder %v305_v14, 0  ;;  %v308_v15 = vmul.bf16 1045249613, %v304_v13  ;;  %v309_v16 = vmul.bf16 1045249613, %v305_v14 }
  0x8a   : > { %v310_v17 = vsel %vm306_vm0, %v304_v13, %v308_v15  ;;  %v311_v18 = vsel %vm307_vm1, %v305_v14, %v309_v16 }
  0x8b   : > { %v513_v19 = vcombine.low %v310_v17, %v311_v18 }
  0x8d   : > { %318 = vxpose.xlu0.c.b16.start.end [1/1] (short) (narrow) %v513_v19, 32 }
  0xf3   : > { %v326_v20 = vpop.trf.xlu0 }
  0xf4   : > { %v514_v21 = vcombine.low %v326_v20, %v326_v20  ;;  %v515_v22 = vcombine.high %v326_v20, %v326_v20 }
  0xf6   : > { %349 = vst.msk [vmem:[%s281_s24] sm:$0xf] %vm348_vm2, %v514_v21  ;;  %350 = vst.msk [vmem:[%s281_s24 + $0x4] sm:$0xf] %vm348_vm2, %v515_v22 }
  0xf7   : > { %v327_v23 = vpop.trf.xlu0 }
  0xf8   : > { %v516_v24 = vcombine.low %v327_v23, %v327_v23  ;;  %v517_v25 = vcombine.high %v327_v23, %v327_v23 }
  0xfa   : > { %351 = vst.msk [vmem:[%s281_s24 + $0x8] sm:$0xf] %vm348_vm2, %v516_v24  ;;  %352 = vst.msk [vmem:[%s281_s24 + $0xc] sm:$0xf] %vm348_vm2, %v517_v25 }
  0xfb   : > { %706 = shalt.err (!%p703_p13)
}
  0xfc   : > { %s707_s0 = scalar_lea.hbm %s1032_s10, 256  ;;  %s711_s6 = scalar_lea.hbm %s1084_s3, 512 }
  0xfd   : > { %p708_p11 = scmp.ne.s32.totalorder %s1032_s10, %s707_s0  ;;  %p712_p7 = scmp.lt.u32.totalorder %s1032_s10, %s1084_s3 }
  0xfe   : > { %p713_p3 = scmp.lt.u32.totalorder %s711_s6, %s707_s0  ;;  %p715_p0 = scmp.lt.u32.totalorder %s707_s0, %s1032_s10 }
  0xff   : > { %p709_p2 = pnand %p708_p11, %p1110_p10 }
 0x100   : > { %p714_p4 = por %p713_p3, %p712_p7 }
 0x101   : > { %p710_p5 = pneg %p709_p2 }
 0x102   : > { %p716_p8 = por %p715_p0, %p714_p4 }
 0x104   : > { %p717_p9 = pnand %p716_p8, %p710_p5 }
 0x106   : > { %720 = shalt.err (!%p717_p9)
}
 0x107   : > { %s787_s9 = smov 64   ;;  %s788_s29 = smov 4  }
 0x108   : > { %532 = dma.vmem_to_hbm [thread:$0]  (%p1110_p10), %s1027_s7, 256, %s1032_s10, %s354_s19, %s787_s9, %s787_s9, %s788_s29  }
 0x109 PF: > { %s383_s18 = sand.u32 1, %s759_s12   ;;  %p1111_p12 = scmp.ne.s32.totalorder %s1097_s27, 0 }
 0x10a   : > { %p1112_p1 = scmp.ge.s32.totalorder %s779_s17, 2  ;;  %s384_s24 = scalar_lea.sflag [#allocation4], %s383_s18 }
 0x10c   : > { %p545_p6 = pnand %p1112_p1, %p1111_p12 }
 0x10e   : > { %754 = dma.done.wait (!%p545_p6), %s384_s24, 256  }
 0x10f   : > { %756 = vsyncadd (!%p545_p6), %s384_s24, 4294967040  ;;  %s22_s17 = sadd.s32 1, %s779_s17   ;;  %s1113_s25 = sld [smem:[#allocation12_spill]] }
 0x110   : > { %p19_p13 = scmp.ge.s32.totalorder %s22_s17, 4   ;;  %s1114_s12 = smov %s763_s13 }
 0x111   : > { %s1115_s13 = smov %s767_s14  ;;  %s1116_s14 = smov %s869_s26 }
 0x112   : > { %s1117_s15 = smov %s775_s16  ;;  %21 = sbr.rel (!%p19_p13) target bundleno = 11 (0xb), region = 101 }
 0x115   : > { %s1118_s16 = smov %s1113_s25 }
 0x119   :  { %389 = vsyncpa [#allocation3], 1 }
 0x11a   :  { %391 = vsyncpa [#allocation3 + $0x1], 1 }
 0x11b   :  { %392 = vsyncpa [#allocation6], 1 }
 0x11c   :  { %394 = vsyncpa [#allocation6 + $0x1], 1 }
 0x11d   :  { %395 = vsyncpa [#allocation4], 1 }
 0x11e   :  { %397 = vsyncpa [#allocation4 + $0x1], 1 }

</bundles_post_ra>
